<compile_context>
chip_gen: v7x
topology: tpu7x:2x2x1
jax: 0.10.0
libtpu: 0.0.40
codegen_flags: <defaults>
</compile_context>

<pallas_src>
import jax
import jax.numpy as jnp
from jax.experimental import pallas as pl
from jax.experimental.pallas import tpu as pltpu


def _prompt_concat_kernel(prefix_ref, ctx_ref, suffix_ref, out_ref):
    # prefix_ref : (TC, 1,     D)  -- SOS embeddings for this class block
    # ctx_ref    : (n_ctx, D)      -- shared learned context (generic CoOp)
    #              or (TC, n_ctx, D) for class-specific context (CSC)
    # suffix_ref : (TC, n_suf, D)  -- class name + EOS + pad embeddings
    # out_ref    : (TC, n_tkn, D)
    tc = out_ref.shape[0]
    ctx = ctx_ref[...]
    if ctx.ndim == 2:  # generic context: broadcast over the class block
        ctx = jnp.broadcast_to(ctx[None], (tc,) + ctx.shape)
    # Build the full tile once and do a single unmasked full-tile store
    # (avoids masked partial vst at sublane offsets 1 and 1 + n_ctx).
    out_ref[...] = jnp.concatenate([prefix_ref[...], ctx, suffix_ref[...]],
                                   axis=1)


def _choose_class_block(n_cls, n_tkn, ctx_dim, itemsize,
                        vmem_budget_bytes=12 * 1024 * 1024):
    """Pick how many classes to process per grid step.

    Per class per step we hold roughly (prefix + suffix) inputs plus the
    n_tkn-token output block, each double-buffered: ~4 * n_tkn * D * itemsize.
    Keep the total under `vmem_budget_bytes` so pipelining survives on every
    chip (v5e 16 MiB / v6e 32 MiB / v7x 32 MiB scoped VMEM defaults).
    """
    per_class = 4 * n_tkn * ctx_dim * itemsize
    tc = max(1, min(n_cls, vmem_budget_bytes // per_class))
    if n_cls >= 2:
        # Keep >= 2 grid steps so v7x's two TensorCores both get work.
        tc = min(tc, max(1, n_cls // 2))
    # Make tc an exact divisor of n_cls (simple, no ragged edge blocks).
    while n_cls % tc:
        tc -= 1
    return tc


def prompt_learner_forward(token_prefix, ctx, token_suffix):
    """prompts = concat([prefix, broadcast(ctx), suffix], axis=1).

    token_prefix: (n_cls, 1, ctx_dim)
    ctx:          (n_ctx, ctx_dim)            -- generic context, or
                  (n_cls, n_ctx, ctx_dim)     -- class-specific (CSC) context
    token_suffix: (n_cls, n_suf, ctx_dim)
    returns:      (n_cls, 1 + n_ctx + n_suf, ctx_dim)
    """
    n_cls, _, ctx_dim = token_prefix.shape
    n_ctx = ctx.shape[-2]
    n_suf = token_suffix.shape[1]
    n_tkn = 1 + n_ctx + n_suf
    dtype = ctx.dtype

    tc = _choose_class_block(n_cls, n_tkn, ctx_dim, jnp.dtype(dtype).itemsize)
    grid = (n_cls // tc,)

    if ctx.ndim == 3:
        # Class-specific context: one block of TC classes per step.
        ctx_spec = pl.BlockSpec((tc, n_ctx, ctx_dim), lambda i: (i, 0, 0))
    else:
        # Generic context: same (tiny) block revisited every step.
        ctx_spec = pl.BlockSpec((n_ctx, ctx_dim), lambda i: (0, 0))

    return pl.pallas_call(
        _prompt_concat_kernel,
        out_shape=jax.ShapeDtypeStruct((n_cls, n_tkn, ctx_dim), dtype),
        grid_spec=pltpu.PrefetchScalarGridSpec(
            num_scalar_prefetch=0,
            grid=grid,
            in_specs=[
                pl.BlockSpec((tc, 1, ctx_dim), lambda i: (i, 0, 0)),
                ctx_spec,
                pl.BlockSpec((tc, n_suf, ctx_dim), lambda i: (i, 0, 0)),
            ],
            out_specs=pl.BlockSpec((tc, n_tkn, ctx_dim), lambda i: (i, 0, 0)),
        ),
        compiler_params=pltpu.CompilerParams(
            dimension_semantics=("parallel",),
            vmem_limit_bytes=32 * 1024 * 1024,
        ),
    )(token_prefix, ctx, token_suffix)


def prompt_learner_reference(token_prefix, ctx, token_suffix):
    n_cls = token_prefix.shape[0]
    if ctx.ndim == 2:
        ctx = jnp.broadcast_to(ctx[None], (n_cls,) + ctx.shape)
    return jnp.concatenate([token_prefix, ctx, token_suffix], axis=1)


if __name__ == "__main__":
    # Small but representative CLIP-like shapes:
    #   n_cls = 16 classes, n_ctx = 4 context tokens, sequence length 77,
    #   ctx_dim = 128 (lane-dense; real CLIP widths 512/768 are also
    #   multiples of 128).
    n_cls, n_ctx, n_tkn, ctx_dim = 16, 4, 77, 128
    n_suf = n_tkn - 1 - n_ctx
    dtype = jnp.float32

    key = jax.random.PRNGKey(0)
    k_ctx, k_pre, k_suf = jax.random.split(key, 3)

    # nn.init.normal_(ctx_vectors, std=0.02)  (generic, non-CSC context)
    ctx = (0.02 * jax.random.normal(k_ctx, (n_ctx, ctx_dim))).astype(dtype)
    # Stand-ins for clip_model.token_embedding(tokenized_prompts):
    #   token_prefix = embedding[:, :1, :], token_suffix = embedding[:, 1+n_ctx:, :]
    token_prefix = jax.random.normal(k_pre, (n_cls, 1, ctx_dim)).astype(dtype)
    token_suffix = jax.random.normal(k_suf, (n_cls, n_suf, ctx_dim)).astype(dtype)

    prompts = jax.block_until_ready(
        prompt_learner_forward(token_prefix, ctx, token_suffix))

    ref = prompt_learner_reference(token_prefix, ctx, token_suffix)
    assert prompts.shape == (n_cls, n_tkn, ctx_dim), prompts.shape
    assert jnp.array_equal(prompts, ref), "mismatch vs reference concat"

    # Also exercise the class-specific (CSC) context path.
    ctx_csc = (0.02 * jax.random.normal(k_ctx, (n_cls, n_ctx, ctx_dim))
               ).astype(dtype)
    prompts_csc = jax.block_until_ready(
        prompt_learner_forward(token_prefix, ctx_csc, token_suffix))
    ref_csc = prompt_learner_reference(token_prefix, ctx_csc, token_suffix)
    assert jnp.array_equal(prompts_csc, ref_csc), "mismatch vs CSC reference"

    print("KERNEL_OK")
</pallas_src>

<mosaic_0001>
module attributes {stable_mosaic.version = 11 : i64} {
  func.func @_prompt_concat_kernel(%arg0: i32, %arg1: memref<8x1x128xf32, #tpu.memory_space<vmem>>, %arg2: memref<4x128xf32, #tpu.memory_space<vmem>>, %arg3: memref<8x72x128xf32, #tpu.memory_space<vmem>>, %arg4: memref<8x77x128xf32, #tpu.memory_space<vmem>>) attributes {dimension_semantics = [#tpu.dimension_semantics<parallel>], iteration_bounds = array<i64: 2>, scalar_prefetch = 0 : i64, scratch_operands = 0 : i64, tpu.core_type = #tpu.core_type<tc>, window_params = [{transform_indices = @transform_0, window_bounds = array<i64: 8, 1, 128>}, {pipeline_mode = #tpu.pipeline_mode<synchronous>, transform_indices = @transform_1, window_bounds = array<i64: 4, 128>}, {transform_indices = @transform_2, window_bounds = array<i64: 8, 72, 128>}, {transform_indices = @transform_3, window_bounds = array<i64: 8, 77, 128>}]} {
    %c0 = arith.constant 0 : index
    %c0_0 = arith.constant 0 : index
    %0 = vector.load %arg2[%c0, %c0_0] : memref<4x128xf32, #tpu.memory_space<vmem>>, vector<4x128xf32>
    %1 = vector.shape_cast %0 : vector<4x128xf32> to vector<1x4x128xf32>
    %2 = vector.shape_cast %1 : vector<1x4x128xf32> to vector<1x4x128xf32>
    %3 = vector.broadcast %2 : vector<1x4x128xf32> to vector<8x4x128xf32>
    %c0_1 = arith.constant 0 : index
    %c0_2 = arith.constant 0 : index
    %c0_3 = arith.constant 0 : index
    %4 = vector.load %arg1[%c0_1, %c0_2, %c0_3] : memref<8x1x128xf32, #tpu.memory_space<vmem>>, vector<8x1x128xf32>
    %c0_4 = arith.constant 0 : index
    %c0_5 = arith.constant 0 : index
    %c0_6 = arith.constant 0 : index
    %5 = vector.load %arg3[%c0_4, %c0_5, %c0_6] : memref<8x72x128xf32, #tpu.memory_space<vmem>>, vector<8x72x128xf32>
    %6 = tpu.concatenate %4, %3, %5 in 1 : vector<8x1x128xf32>, vector<8x4x128xf32>, vector<8x72x128xf32> -> vector<8x77x128xf32>
    %c0_7 = arith.constant 0 : index
    %c0_8 = arith.constant 0 : index
    %c0_9 = arith.constant 0 : index
    %7 = vector.load %arg4[%c0_7, %c0_8, %c0_9] : memref<8x77x128xf32, #tpu.memory_space<vmem>>, vector<8x77x128xf32>
    tpu.vector_store %arg4[%c0_7, %c0_8, %c0_9], %6 {strides = array<i32>} : memref<8x77x128xf32, #tpu.memory_space<vmem>>, vector<8x77x128xf32>,
    return
  }
  func.func @transform_0(%arg0: i32) -> (i32, i32, i32) {
    %c0_i32 = arith.constant 0 : i32
    %c0_i32_0 = arith.constant 0 : i32
    %c0_i32_1 = arith.constant 0 : i32
    return %arg0, %c0_i32, %c0_i32_0 : i32, i32, i32
  }
  func.func @transform_1(%arg0: i32) -> (i32, i32) {
    %c0_i32 = arith.constant 0 : i32
    %c0_i32_0 = arith.constant 0 : i32
    %c0_i32_1 = arith.constant 0 : i32
    return %c0_i32, %c0_i32_0 : i32, i32
  }
  func.func @transform_2(%arg0: i32) -> (i32, i32, i32) {
    %c0_i32 = arith.constant 0 : i32
    %c0_i32_0 = arith.constant 0 : i32
    %c0_i32_1 = arith.constant 0 : i32
    return %arg0, %c0_i32, %c0_i32_0 : i32, i32, i32
  }
  func.func @transform_3(%arg0: i32) -> (i32, i32, i32) {
    %c0_i32 = arith.constant 0 : i32
    %c0_i32_0 = arith.constant 0 : i32
    %c0_i32_1 = arith.constant 0 : i32
    return %arg0, %c0_i32, %c0_i32_0 : i32, i32, i32
  }
}

</mosaic_0001>

<bundles_post_ra>
// kernel: tpu_custom_call.1
= control target key start
LH: loop header
LB: loop body
LE: loop exit
PB: predicated region body
PF: predicated region fallthrough
CT: control target
= control target key end

     0   :  { %8 = vsyncpa [#allocation3], 0  ;;  %s1499_s0 = inlined_call_operand.hbm [shape: f32[16,1,128], index: 0, kind: input, shape index: {}]   ;;  %s1500_s1 = inlined_call_operand.hbm [shape: f32[4,128], index: 1, kind: input, shape index: {}]   ;;  %s1501_s2 = inlined_call_operand.hbm [shape: f32[16,72,128], index: 2, kind: input, shape index: {}]   ;;  %s1502_s3 = inlined_call_operand.vmem [shape: f32[16,77,128], index: 3, kind: output, shape index: {}]  }
   0x1   :  { %10 = vsyncpa [#allocation3 + $0x1], 0 }
   0x2   :  { %11 = vsyncpa [#allocation5], 0  ;;  %s1057_s12 = smov 0   ;;  %s1059_s13 = smov 0  }
   0x3   :  { %s1061_s14 = smov 0   ;;  %s1063_s15 = smov 0  }
   0x4 LB: > { %s1078_s16 = sadd.s32 1, %s1028_s15   ;;  %s24_s17 = sadd.s32 1, %s1024_s14  ;;  %s1028_s15 = sphi %s1063_s15, %s1523_s15   ;;  %s1024_s14 = sphi %s1061_s14, %s1522_s14   ;;  %s1020_s13 = sphi %s1059_s13, %s1521_s13   ;;  %s1016_s12 = sphi %s1057_s12, %s1520_s12  }
   0x5   : > { %s21_s18 = ssub.s32 %s1028_s15, %s1078_s16  ;;  %p31_p0 = scmp.ne.s32.totalorder %s1024_s14, %s1020_s13 }
   0x6   : > { %p22_p1 = scmp.eq.s32.totalorder %s21_s18, 0  ;;  %p32_p2 = scmp.eq.s32.totalorder %s1028_s15, 0 }
   0x7   : > { %p859_p3 = scmp.lt.s32.totalorder %s1028_s15, 2  ;;  %s145_s20 = sand.u32 1, %s1028_s15  }
   0x8   : > { %s1088_s19 = scalar_select %p22_p1, %s1024_s14, %s24_s17  }
   0x9   : > { %p33_p4 = por %p32_p2, %p31_p0  ;;  %s147_s21 = sand.u32 1, %s1024_s14  }
   0xa   : > { %s821_s22 = sshll.u32 %s147_s21, 3  ;;  %s834_s23 = sshll.u32 %s1028_s15, 7 }
   0xb   : > { %s1098_s26 = scalar_lea.hbm %s1499_s0, %s834_s23  ;;  %s149_s27 = scalar_lea.vmem [#allocation2], %s821_s22 }
   0xc   : > { %s156_s28 = sshll.u32 %s149_s27, 4  ;;  %p1100_p5 = pnand %p859_p3, %p33_p4  ;;  %s1104_s28 = int_to_ptr.vmem [resolvable:$true] %s156_s28 }
   0xd   : > { %s1106_s30 = scalar_lea.sflag [#allocation3], %s145_s20  ;;  %s898_s4 = scalar_lea.hbm %s1098_s26, 128 }
   0xe   : > { %s1509_s29 = scalar_select %p1100_p5, 1, 0 }
   0xf   : > { %p899_p6 = scmp.ne.s32.totalorder %s1098_s26, %s898_s4  ;;  %p1504_p7 = pneg %p1100_p5 }
  0x10   : > { %s903_s7 = scalar_lea.hbm %s1499_s0, 256  ;;  %p904_p10 = scmp.lt.u32.totalorder %s1098_s26, %s1499_s0 }
  0x11   : > { %p901_p8 = pnand %p1504_p7, %p899_p6  ;;  %p905_p11 = scmp.lt.u32.totalorder %s903_s7, %s898_s4 }
  0x12   : > { %p907_p13 = scmp.lt.u32.totalorder %s898_s4, %s1098_s26 }
  0x13   : > { %p902_p9 = pneg %p901_p8  ;;  %p906_p12 = por %p905_p11, %p904_p10 }
  0x15   : > { %p908_p0 = por %p907_p13, %p906_p12 }
  0x17   : > { %p909_p1 = pnand %p908_p0, %p902_p9 }
  0x19   : > { %912 = shalt.err (!%p909_p1)
}
  0x1a   : > { %s913_s10 = scalar_lea.vmem %s1104_s28, 128  ;;  %s1030_s11 = smov [#allocation2]  }
  0x1b   : > { %p914_p2 = scmp.ne.s32.totalorder %s1104_s28, %s913_s10  ;;  %s918_s17 = sshll.u32 %s1030_s11, 4  ;;  %s919_s17 = int_to_ptr.vmem [resolvable:$false] %s918_s17 }
  0x1c   : > { %s920_s18 = scalar_lea.vmem %s919_s17, 256  ;;  %p921_p6 = scmp.lt.s32.totalorder %s1104_s28, %s919_s17 }
  0x1d   : > { %p916_p3 = pnand %p914_p2, %p1504_p7  ;;  %p922_p8 = scmp.lt.s32.totalorder %s920_s18, %s913_s10 }
  0x1f   : > { %p917_p4 = pneg %p916_p3  ;;  %p923_p10 = por %p922_p8, %p921_p6 }
  0x21   : > { %p924_p11 = pnand %p923_p10, %p917_p4 }
  0x23   : > { %927 = shalt.err (!%p924_p11)
}
  0x24   : > { %s1031_s20 = smov 16   ;;  %s1032_s22 = smov 1  }
  0x25   : > { %854 = dma.hbm_to_vmem [thread:$0]  (!%p1100_p5), %s1098_s26, 128, %s1104_s28, %s1106_s30, %s1031_s20, %s1031_s20, %s1032_s22  }
  0x26   : > { %s835_s23 = smul.u32 576, %s147_s21  ;;  %s1137_s24 = sadd.s32 4294967295, %s1028_s15  }
  0x27   : > { %p37_p9 = scmp.ne.s32.totalorder %s1020_s13, %s1016_s12  ;;  %p1503_p12 = scmp.eq.s32.totalorder %s1137_s24, 0 }
  0x28   : > { %p818_p13 = scmp.ge.s32.totalorder %s1028_s15, 1  ;;  %p121_p0 = scmp.lt.s32.totalorder %s1028_s15, 3 }
  0x29   : > { %p1146_p1 = por %p1503_p12, %p37_p9  ;;  %s1033_s21 = smov [#allocation4]  }
  0x2a   : > { %p1150_p2 = pnand %p818_p13, %p121_p0  ;;  %s134_s26 = sshll.u32 %s1033_s21, 4  ;;  %s135_s26 = int_to_ptr.vmem [resolvable:$true] %s134_s26 }
  0x2b   : > { %s1510_s25 = scalar_select %p1146_p1, 1, 0 }
  0x2c   : > { %s1511_s27 = scalar_select %p1150_p2, 1, 0 }
  0x2d   : > { %s836_s28 = smul.u32 9216, %s1028_s15  ;;  %p847_p3 = pneg %p1150_p2 }
  0x2e   : > { %s170_s4 = scalar_lea.vmem [#allocation6], %s835_s23  ;;  %s928_s10 = scalar_lea.hbm %s1500_s1, 64 }
  0x2f   : > { %s178_s12 = sshll.u32 %s170_s4, 4  ;;  %s1160_s7 = scalar_lea.hbm %s1501_s2, %s836_s28  ;;  %s1168_s12 = int_to_ptr.vmem [resolvable:$true] %s178_s12 }
  0x30   : > { %p1164_p4 = pnand %p847_p3, %p1503_p12  ;;  %p929_p6 = scmp.ne.s32.totalorder %s1500_s1, %s928_s10 }
  0x31   : > { %p935_p9 = scmp.lt.u32.totalorder %s928_s10, %s1500_s1 }
  0x32   : > { %p930_p8 = pneg %p1164_p4 }
  0x34   : > { %p931_p10 = pnand %p930_p8, %p929_p6 }
  0x36   : > { %p932_p11 = pneg %p931_p10 }
  0x38   : > { %p937_p13 = pnand %p935_p9, %p932_p11 }
  0x3a   : > { %940 = shalt.err (!%p937_p13)
}
  0x3b   : > { %s941_s22 = scalar_lea.vmem %s135_s26, 64  ;;  %p949_p7 = scmp.lt.s32.totalorder %s135_s26, %s135_s26 }
  0x3c   : > { %p942_p0 = scmp.ne.s32.totalorder %s135_s26, %s941_s22  ;;  %p950_p1 = scmp.lt.s32.totalorder %s941_s22, %s941_s22 }
  0x3e   : > { %p944_p3 = pnand %p942_p0, %p930_p8  ;;  %p951_p2 = por %p950_p1, %p949_p7 }
  0x40   : > { %p945_p12 = pneg %p944_p3 }
  0x42   : > { %p952_p5 = pnand %p951_p2, %p945_p12 }
  0x44   : > { %955 = shalt.err (!%p952_p5)
}
  0x45   : > { %850 = dma.hbm_to_vmem [thread:$0]  (!%p1164_p4), %s1500_s1, 64, %s135_s26, [#allocation5]  }
  0x46   : > { %s956_s28 = scalar_lea.hbm %s1160_s7, 9216  ;;  %p1513_p8 = scmp.ne.s32.totalorder %s1509_s29, 0 }
  0x47   : > { %p957_p6 = scmp.ne.s32.totalorder %s1160_s7, %s956_s28  ;;  %s961_s6 = scalar_lea.hbm %s1501_s2, 18432 }
  0x48   : > { %p1514_p10 = pneg %p1513_p8  ;;  %p962_p5 = scmp.lt.u32.totalorder %s1160_s7, %s1501_s2 }
  0x49   : > { %p963_p7 = scmp.lt.u32.totalorder %s961_s6, %s956_s28  ;;  %p965_p1 = scmp.lt.u32.totalorder %s956_s28, %s1160_s7 }
  0x4a   : > { %p959_p11 = pnand %p957_p6, %p1514_p10 }
  0x4b   : > { %p964_p12 = por %p963_p7, %p962_p5 }
  0x4c   : > { %p960_p9 = pneg %p959_p11 }
  0x4d   : > { %p966_p2 = por %p965_p1, %p964_p12 }
  0x4f   : > { %p967_p13 = pnand %p966_p2, %p960_p9 }
  0x51   : > { %970 = shalt.err (!%p967_p13)
}
  0x52   : > { %s971_s26 = scalar_lea.vmem %s1168_s12, 9216  ;;  %p1515_p0 = pmov %p1514_p10 }
  0x53   : > { %p972_p4 = scmp.ne.s32.totalorder %s1168_s12, %s971_s26  ;;  %s1034_s15 = smov [#allocation6]  }
  0x54   : > { %s976_s10 = sshll.u32 %s1034_s15, 4  ;;  %s977_s10 = int_to_ptr.vmem [resolvable:$false] %s976_s10 }
  0x55   : > { %p974_p3 = pnand %p972_p4, %p1515_p0  ;;  %s978_s11 = scalar_lea.vmem %s977_s10, 18432 }
  0x56   : > { %p979_p10 = scmp.lt.s32.totalorder %s1168_s12, %s977_s10  ;;  %p980_p11 = scmp.lt.s32.totalorder %s978_s11, %s971_s26 }
  0x57   : > { %p975_p6 = pneg %p974_p3 }
  0x58   : > { %p981_p5 = por %p980_p11, %p979_p10 }
  0x5a   : > { %p982_p7 = pnand %p981_p5, %p975_p6 }
  0x5c   : > { %985 = shalt.err (!%p982_p7)
}
  0x5d   : > { %s1035_s17 = smov 128   ;;  %s1036_s18 = smov 8  }
  0x5e   : > { %857 = dma.hbm_to_vmem [thread:$0]  (!%p1513_p8), %s1160_s7, 9216, %s1168_s12, %s1106_s30, %s1035_s17, %s1035_s17, %s1036_s18  }
  0x5f   : > { %p1516_p9 = scmp.ne.s32.totalorder %s1511_s27, 0 }
  0x60   : > { %s192_s20 = sand.u32 (!%p1516_p9), 1, %s1137_s24   ;;  %s194_s22 = sand.u32 (!%p1516_p9), 1, %s1020_s13  }
  0x61   : > { %190 = sbr.rel (%p1516_p9) target bundleno = 160 (0xa0), region = 32  ;;  %s828_s23 = sshll.u32 (!%p1516_p9), %s194_s22, 3 }
  0x62   : > { %s193_s21 = scalar_lea.sflag (!%p1516_p9), [#allocation3], %s192_s20  ;;  %s1214_s28 = scalar_lea.vmem (!%p1516_p9), [#allocation2], %s828_s23 }
  0x63   : > { %p1517_p12 = scmp.ne.s32.totalorder (!%p1516_p9), %s1510_s25, 0 }
  0x68   : > { %1003 = dma.done.wait (%p1517_p12), %s193_s21, 128  }
  0x69   : > { %1005 = vsyncadd (%p1517_p12), %s193_s21, 4294967168  ;;  %p1518_p1 = scmp.eq.s32.totalorder %s1137_s24, 0 }
  0x6b   : > { %1007 = dma.done.wait (%p1518_p1), [#allocation5], 64   ;;  %p1519_p8 = pmov %p1518_p1 }
  0x6c   : > { %s837_s29 = smul.u32 576, %s194_s22 }
  0x6d   : > { %1009 = vsyncadd (%p1519_p8), [#allocation5], 4294967232 }
  0x6e   : > { %s1224_s30 = scalar_lea.vmem [#allocation6], %s837_s29 }
  0x6f   : > { %1011 = dma.done.wait (%p1517_p12), %s193_s21, 9216  }
  0x70   : > { %1013 = vsyncadd (%p1517_p12), %s193_s21, 4294958080  ;;  %s830_s27 = sshll.u32 %s1137_s24, 3  ;;  %v247_v0 = vld [vmem:[#allocation4] sm:$0xf]  ;;  %v248_v1 = vld [vmem:[%s1214_s28] sm:$0x1] }
  0x71   : > { %p241_p2 = scmp.lt.s32.totalorder %s830_s27, 15  ;;  %v256_v2 = vld [vmem:[%s1224_s30] sm:$0xff]  ;;  %vm620_vm0 = vcmask 1040384   ;;  %v1233_v3 = vrot.slane %v247_v0, 7  ;;  %vm403_vm1 = vcmask 1044480   ;;  %v257_v5 = vld [vmem:[%s1224_s30 + $0x8] sm:$0xff] }
  0x72   : > { %v404_v4 = vrot.slane %v256_v2, 3  ;;  %v258_v6 = vld [vmem:[%s1224_s30 + $0x10] sm:$0xff]  ;;  %v259_v7 = vld [vmem:[%s1224_s30 + $0x18] sm:$0xff]  ;;  %v405_v8 = vrot.slane %v257_v5, 3  ;;  %v260_v11 = vld [vmem:[%s1224_s30 + $0x20] sm:$0xff] }
  0x73   : > { %s1525_s27 = smov (!%p241_p2, %s830_s27), 15  ;;  %v407_v9 = vrot.slane %v258_v6, 3  ;;  %v409_v10 = vrot.slane %v259_v7, 3  ;;  %v261_v12 = vld [vmem:[%s1224_s30 + $0x28] sm:$0xff]  ;;  %v262_v13 = vld [vmem:[%s1224_s30 + $0x30] sm:$0xff]  ;;  %v621_v14 = vsel %vm620_vm0, %v248_v1, %v1233_v3  ;;  %v411_v15 = vrot.slane %v260_v11, 3 }
  0x74   : > { %s838_s12 = smul.u32 80, %s1525_s27  ;;  %v413_v16 = vrot.slane %v261_v12, 3  ;;  %v415_v17 = vrot.slane %v262_v13, 3  ;;  %v263_v18 = vld [vmem:[%s1224_s30 + $0x38] sm:$0xff]  ;;  %v264_v19 = vld [vmem:[%s1224_s30 + $0x40] sm:$0xff]  ;;  %v265_v20 = vld [vmem:[%s1224_s30 + $0x48] sm:$0xff]  ;;  %v629_v21 = vsel %vm403_vm1, %v621_v14, %v404_v4  ;;  %v406_v22 = vsel %vm403_vm1, %v404_v4, %v405_v8 }
  0x75   : > { %v408_v23 = vsel %vm403_vm1, %v405_v8, %v407_v9  ;;  %v410_v24 = vsel %vm403_vm1, %v407_v9, %v409_v10  ;;  %v249_v25 = vld [vmem:[%s1214_s28 + $0x1] sm:$0x1]  ;;  %v267_v27 = vld [vmem:[%s1224_s30 + $0x58] sm:$0xff]  ;;  %v412_v28 = vsel %vm403_vm1, %v409_v10, %v411_v15  ;;  %v417_v31 = vrot.slane %v263_v18, 3  ;;  %v268_v32 = vld [vmem:[%s1224_s30 + $0x60] sm:$0xff] }
  0x76   : > { %s1241_s7 = scalar_lea.vmem %s1502_s3, %s838_s12  ;;  %v266_v26 = vld [vmem:[%s1224_s30 + $0x50] sm:$0xff]  ;;  %v414_v29 = vsel %vm403_vm1, %v411_v15, %v413_v16  ;;  %v416_v30 = vsel %vm403_vm1, %v413_v16, %v415_v17  ;;  %v269_v33 = vld [vmem:[%s1224_s30 + $0x68] sm:$0xff]  ;;  %v419_v35 = vrot.slane %v264_v19, 3  ;;  %v421_v36 = vrot.slane %v265_v20, 3  ;;  %v271_v39 = vld [vmem:[%s1224_s30 + $0x78] sm:$0xff] }
  0x77   : > { %637 = vst [vmem:[%s1241_s7] sm:$0xff] %v629_v21  ;;  %638 = vst [vmem:[%s1241_s7 + $0x8] sm:$0xff] %v406_v22  ;;  %v270_v34 = vld [vmem:[%s1224_s30 + $0x70] sm:$0xff]  ;;  %v622_v37 = vsel %vm620_vm0, %v249_v25, %v1233_v3  ;;  %v422_v38 = vrot.slane %v266_v26, 3  ;;  %v418_v40 = vsel %vm403_vm1, %v415_v17, %v417_v31  ;;  %v424_v41 = vrot.slane %v267_v27, 3  ;;  %v272_v44 = vld [vmem:[%s1224_s30 + $0x80] sm:$0xff] }
  0x78   : > { %639 = vst [vmem:[%s1241_s7 + $0x10] sm:$0xff] %v408_v23  ;;  %640 = vst [vmem:[%s1241_s7 + $0x18] sm:$0xff] %v410_v24  ;;  %v426_v42 = vrot.slane %v268_v32, 3  ;;  %v428_v43 = vrot.slane %v269_v33, 3  ;;  %v273_v45 = vld [vmem:[%s1224_s30 + $0x88] sm:$0xff]  ;;  %v274_v46 = vld [vmem:[%s1224_s30 + $0x90] sm:$0xff]  ;;  %v420_v47 = vsel %vm403_vm1, %v417_v31, %v419_v35  ;;  %v630_v48 = vsel %vm403_vm1, %v622_v37, %v421_v36 }
  0x79   : > { %641 = vst [vmem:[%s1241_s7 + $0x20] sm:$0xff] %v412_v28  ;;  %642 = vst [vmem:[%s1241_s7 + $0x28] sm:$0xff] %v414_v29  ;;  %v423_v49 = vsel %vm403_vm1, %v421_v36, %v422_v38  ;;  %v430_v50 = vrot.slane %v270_v34, 3  ;;  %v250_v51 = vld [vmem:[%s1214_s28 + $0x2] sm:$0x1]  ;;  %v275_v52 = vld [vmem:[%s1224_s30 + $0x98] sm:$0xff]  ;;  %v425_v54 = vsel %vm403_vm1, %v422_v38, %v424_v41 }
  0x7a   : > { %643 = vst [vmem:[%s1241_s7 + $0x30] sm:$0xff] %v416_v30  ;;  %644 = vst [vmem:[%s1241_s7 + $0x38] sm:$0xff] %v418_v40  ;;  %v276_v53 = vld [vmem:[%s1224_s30 + $0xa0] sm:$0xff]  ;;  %v427_v55 = vsel %vm403_vm1, %v424_v41, %v426_v42  ;;  %v429_v56 = vsel %vm403_vm1, %v426_v42, %v428_v43  ;;  %v432_v57 = vrot.slane %v271_v39, 3  ;;  %v277_v58 = vld [vmem:[%s1224_s30 + $0xa8] sm:$0xff]  ;;  %v434_v60 = vrot.slane %v272_v44, 3 }
  0x7b   : > { %646 = vst [vmem:[%s1241_s7 + $0x48] sm:$0x1f] %v419_v35  ;;  %645 = vst [vmem:[%s1241_s7 + $0x40] sm:$0xff] %v420_v47  ;;  %v431_v59 = vsel %vm403_vm1, %v428_v43, %v430_v50  ;;  %v436_v61 = vrot.slane %v273_v45, 3  ;;  %v438_v62 = vrot.slane %v274_v46, 3  ;;  %v278_v63 = vld [vmem:[%s1224_s30 + $0xb0] sm:$0xff]  ;;  %v623_v2 = vsel %vm620_vm0, %v250_v51, %v1233_v3 }
  0x7c   : > { %647 = vst [vmem:[%s1241_s7 + $0x50] sm:$0xff] %v630_v48  ;;  %648 = vst [vmem:[%s1241_s7 + $0x58] sm:$0xff] %v423_v49  ;;  %v279_v0 = vld [vmem:[%s1224_s30 + $0xb8] sm:$0xff]  ;;  %v433_v1 = vsel %vm403_vm1, %v430_v50, %v432_v57  ;;  %v439_v4 = vrot.slane %v275_v52, 3  ;;  %v441_v5 = vrot.slane %v276_v53, 3  ;;  %v280_v6 = vld [vmem:[%s1224_s30 + $0xc0] sm:$0xff]  ;;  %v435_v9 = vsel %vm403_vm1, %v432_v57, %v434_v60 }
  0x7d   : > { %649 = vst [vmem:[%s1241_s7 + $0x60] sm:$0xff] %v425_v54  ;;  %650 = vst [vmem:[%s1241_s7 + $0x68] sm:$0xff] %v427_v55  ;;  %v281_v7 = vld [vmem:[%s1224_s30 + $0xc8] sm:$0xff]  ;;  %v282_v8 = vld [vmem:[%s1224_s30 + $0xd0] sm:$0xff]  ;;  %v437_v10 = vsel %vm403_vm1, %v434_v60, %v436_v61  ;;  %v631_v11 = vsel %vm403_vm1, %v623_v2, %v438_v62  ;;  %v443_v12 = vrot.slane %v277_v58, 3  ;;  %v445_v17 = vrot.slane %v278_v63, 3 }
  0x7e   : > { %651 = vst [vmem:[%s1241_s7 + $0x70] sm:$0xff] %v429_v56  ;;  %652 = vst [vmem:[%s1241_s7 + $0x78] sm:$0xff] %v431_v59  ;;  %v251_v13 = vld [vmem:[%s1214_s28 + $0x3] sm:$0x1]  ;;  %v283_v14 = vld [vmem:[%s1224_s30 + $0xd8] sm:$0xff]  ;;  %v440_v15 = vsel %vm403_vm1, %v438_v62, %v439_v4  ;;  %v442_v16 = vsel %vm403_vm1, %v439_v4, %v441_v5  ;;  %v447_v18 = vrot.slane %v279_v0, 3 }
  0x7f   : > { %653 = vst [vmem:[%s1241_s7 + $0x80] sm:$0xff] %v433_v1  ;;  %656 = vst [vmem:[%s1241_s7 + $0x98] sm:$0x1f] %v436_v61  ;;  %v284_v19 = vld [vmem:[%s1224_s30 + $0xe0] sm:$0xff]  ;;  %v444_v20 = vsel %vm403_vm1, %v441_v5, %v443_v12  ;;  %v449_v21 = vrot.slane %v280_v6, 3  ;;  %v451_v22 = vrot.slane %v281_v7, 3  ;;  %v446_v27 = vsel %vm403_vm1, %v443_v12, %v445_v17 }
  0x80   : > { %654 = vst [vmem:[%s1241_s7 + $0x88] sm:$0xff] %v435_v9  ;;  %655 = vst [vmem:[%s1241_s7 + $0x90] sm:$0xff] %v437_v10  ;;  %v453_v23 = vrot.slane %v282_v8, 3  ;;  %v285_v24 = vld [vmem:[%s1224_s30 + $0xe8] sm:$0xff]  ;;  %v286_v25 = vld [vmem:[%s1224_s30 + $0xf0] sm:$0xff]  ;;  %v448_v28 = vsel %vm403_vm1, %v445_v17, %v447_v18  ;;  %v455_v29 = vrot.slane %v283_v14, 3  ;;  %v624_v30 = vsel %vm620_vm0, %v251_v13, %v1233_v3 }
  0x81   : > { %657 = vst [vmem:[%s1241_s7 + $0xa0] sm:$0xff] %v631_v11  ;;  %658 = vst [vmem:[%s1241_s7 + $0xa8] sm:$0xff] %v440_v15  ;;  %v287_v26 = vld [vmem:[%s1224_s30 + $0xf8] sm:$0xff]  ;;  %v288_v31 = vld [vmem:[%s1224_s30 + $0x100] sm:$0xff]  ;;  %v450_v34 = vsel %vm403_vm1, %v447_v18, %v449_v21  ;;  %v452_v35 = vsel %vm403_vm1, %v449_v21, %v451_v22  ;;  %v456_v37 = vrot.slane %v284_v19, 3  ;;  %v458_v40 = vrot.slane %v285_v24, 3 }
  0x82   : > { %659 = vst [vmem:[%s1241_s7 + $0xb0] sm:$0xff] %v442_v16  ;;  %660 = vst [vmem:[%s1241_s7 + $0xb8] sm:$0xff] %v444_v20  ;;  %v289_v32 = vld [vmem:[%s1224_s30 + $0x108] sm:$0xff]  ;;  %v290_v33 = vld [vmem:[%s1224_s30 + $0x110] sm:$0xff]  ;;  %v454_v36 = vsel %vm403_vm1, %v451_v22, %v453_v23  ;;  %v632_v39 = vsel %vm403_vm1, %v624_v30, %v455_v29  ;;  %v460_v41 = vrot.slane %v286_v25, 3  ;;  %v462_v42 = vrot.slane %v287_v26, 3 }
  0x83   : > { %661 = vst [vmem:[%s1241_s7 + $0xc0] sm:$0xff] %v446_v27  ;;  %662 = vst [vmem:[%s1241_s7 + $0xc8] sm:$0xff] %v448_v28  ;;  %v291_v38 = vld [vmem:[%s1224_s30 + $0x118] sm:$0xff]  ;;  %v292_v44 = vld [vmem:[%s1224_s30 + $0x120] sm:$0xff]  ;;  %v457_v45 = vsel %vm403_vm1, %v455_v29, %v456_v37  ;;  %v464_v46 = vrot.slane %v288_v31, 3  ;;  %v466_v47 = vrot.slane %v289_v32, 3  ;;  %v459_v51 = vsel %vm403_vm1, %v456_v37, %v458_v40 }
  0x84   : > { %666 = vst [vmem:[%s1241_s7 + $0xe8] sm:$0x1f] %v453_v23  ;;  %663 = vst [vmem:[%s1241_s7 + $0xd0] sm:$0xff] %v450_v34  ;;  %v252_v43 = vld [vmem:[%s1214_s28 + $0x4] sm:$0x1]  ;;  %v468_v48 = vrot.slane %v290_v33, 3  ;;  %v461_v52 = vsel %vm403_vm1, %v458_v40, %v460_v41  ;;  %v463_v53 = vsel %vm403_vm1, %v460_v41, %v462_v42 }
  0x85   : > { %664 = vst [vmem:[%s1241_s7 + $0xd8] sm:$0xff] %v452_v35  ;;  %665 = vst [vmem:[%s1241_s7 + $0xe0] sm:$0xff] %v454_v36  ;;  %v293_v49 = vld [vmem:[%s1224_s30 + $0x128] sm:$0xff]  ;;  %v294_v50 = vld [vmem:[%s1224_s30 + $0x130] sm:$0xff]  ;;  %v470_v54 = vrot.slane %v291_v38, 3  ;;  %v465_v58 = vsel %vm403_vm1, %v462_v42, %v464_v46  ;;  %v467_v59 = vsel %vm403_vm1, %v464_v46, %v466_v47  ;;  %v472_v61 = vrot.slane %v292_v44, 3 }
  0x86   : > { %667 = vst [vmem:[%s1241_s7 + $0xf0] sm:$0xff] %v632_v39  ;;  %668 = vst [vmem:[%s1241_s7 + $0xf8] sm:$0xff] %v457_v45  ;;  %v295_v55 = vld [vmem:[%s1224_s30 + $0x138] sm:$0xff]  ;;  %v296_v56 = vld [vmem:[%s1224_s30 + $0x140] sm:$0xff]  ;;  %v469_v60 = vsel %vm403_vm1, %v466_v47, %v468_v48  ;;  %v625_v1 = vsel %vm620_vm0, %v252_v43, %v1233_v3  ;;  %v473_v2 = vrot.slane %v293_v49, 3  ;;  %v475_v4 = vrot.slane %v294_v50, 3 }
  0x87   : > { %v297_v57 = vld [vmem:[%s1224_s30 + $0x148] sm:$0xff]  ;;  %669 = vst [vmem:[%s1241_s7 + $0x100] sm:$0xff] %v459_v51  ;;  %670 = vst [vmem:[%s1241_s7 + $0x108] sm:$0xff] %v461_v52  ;;  %v298_v62 = vld [vmem:[%s1224_s30 + $0x150] sm:$0xff]  ;;  %v471_v0 = vsel %vm403_vm1, %v468_v48, %v470_v54  ;;  %v633_v6 = vsel %vm403_vm1, %v625_v1, %v472_v61  ;;  %v477_v7 = vrot.slane %v295_v55, 3  ;;  %v479_v8 = vrot.slane %v296_v56, 3 }
  0x88   : > { %671 = vst [vmem:[%s1241_s7 + $0x110] sm:$0xff] %v463_v53  ;;  %v299_v63 = vld [vmem:[%s1224_s30 + $0x158] sm:$0xff]  ;;  %672 = vst [vmem:[%s1241_s7 + $0x118] sm:$0xff] %v465_v58  ;;  %v300_v5 = vld [vmem:[%s1224_s30 + $0x160] sm:$0xff]  ;;  %v481_v9 = vrot.slane %v297_v57, 3  ;;  %v474_v12 = vsel %vm403_vm1, %v472_v61, %v473_v2  ;;  %v476_v13 = vsel %vm403_vm1, %v473_v2, %v475_v4  ;;  %v483_v14 = vrot.slane %v298_v62, 3 }
  0x89   : > { %673 = vst [vmem:[%s1241_s7 + $0x120] sm:$0xff] %v467_v59  ;;  %674 = vst [vmem:[%s1241_s7 + $0x128] sm:$0xff] %v469_v60  ;;  %v253_v10 = vld [vmem:[%s1214_s28 + $0x5] sm:$0x1]  ;;  %v301_v11 = vld [vmem:[%s1224_s30 + $0x168] sm:$0xff]  ;;  %v485_v15 = vrot.slane %v299_v63, 3  ;;  %v478_v19 = vsel %vm403_vm1, %v475_v4, %v477_v7  ;;  %v480_v20 = vsel %vm403_vm1, %v477_v7, %v479_v8 }
  0x8a   : > { %676 = vst [vmem:[%s1241_s7 + $0x138] sm:$0x1f] %v470_v54  ;;  %675 = vst [vmem:[%s1241_s7 + $0x130] sm:$0xff] %v471_v0  ;;  %v302_v16 = vld [vmem:[%s1224_s30 + $0x170] sm:$0xff]  ;;  %v303_v17 = vld [vmem:[%s1224_s30 + $0x178] sm:$0xff]  ;;  %v482_v21 = vsel %vm403_vm1, %v479_v8, %v481_v9  ;;  %v487_v22 = vrot.slane %v300_v5, 3  ;;  %v484_v26 = vsel %vm403_vm1, %v481_v9, %v483_v14  ;;  %v626_v29 = vsel %vm620_vm0, %v253_v10, %v1233_v3 }
  0x8b   : > { %677 = vst [vmem:[%s1241_s7 + $0x140] sm:$0xff] %v633_v6  ;;  %v304_v18 = vld [vmem:[%s1224_s30 + $0x180] sm:$0xff]  ;;  %678 = vst [vmem:[%s1241_s7 + $0x148] sm:$0xff] %v474_v12  ;;  %v305_v23 = vld [vmem:[%s1224_s30 + $0x188] sm:$0xff]  ;;  %v486_v27 = vsel %vm403_vm1, %v483_v14, %v485_v15  ;;  %v489_v28 = vrot.slane %v301_v11, 3  ;;  %v490_v32 = vrot.slane %v302_v16, 3 }
  0x8c   : > { %679 = vst [vmem:[%s1241_s7 + $0x150] sm:$0xff] %v476_v13  ;;  %v306_v24 = vld [vmem:[%s1224_s30 + $0x190] sm:$0xff]  ;;  %v307_v25 = vld [vmem:[%s1224_s30 + $0x198] sm:$0xff]  ;;  %680 = vst [vmem:[%s1241_s7 + $0x158] sm:$0xff] %v478_v19  ;;  %v488_v31 = vsel %vm403_vm1, %v485_v15, %v487_v22  ;;  %v492_v33 = vrot.slane %v303_v17, 3  ;;  %v494_v34 = vrot.slane %v304_v18, 3 }
  0x8d   : > { %681 = vst [vmem:[%s1241_s7 + $0x160] sm:$0xff] %v480_v20  ;;  %682 = vst [vmem:[%s1241_s7 + $0x168] sm:$0xff] %v482_v21  ;;  %v308_v30 = vld [vmem:[%s1224_s30 + $0x1a0] sm:$0xff]  ;;  %v309_v35 = vld [vmem:[%s1224_s30 + $0x1a8] sm:$0xff]  ;;  %v634_v37 = vsel %vm403_vm1, %v626_v29, %v489_v28  ;;  %v496_v38 = vrot.slane %v305_v23, 3  ;;  %v498_v39 = vrot.slane %v306_v24, 3  ;;  %v491_v43 = vsel %vm403_vm1, %v489_v28, %v490_v32 }
  0x8e   : > { %683 = vst [vmem:[%s1241_s7 + $0x170] sm:$0xff] %v484_v26  ;;  %684 = vst [vmem:[%s1241_s7 + $0x178] sm:$0xff] %v486_v27  ;;  %v254_v36 = vld [vmem:[%s1214_s28 + $0x6] sm:$0x1]  ;;  %v500_v40 = vrot.slane %v307_v25, 3  ;;  %v493_v44 = vsel %vm403_vm1, %v490_v32, %v492_v33  ;;  %v495_v45 = vsel %vm403_vm1, %v492_v33, %v494_v34  ;;  %v502_v46 = vrot.slane %v308_v30, 3 }
  0x8f   : > { %686 = vst [vmem:[%s1241_s7 + $0x188] sm:$0x1f] %v487_v22  ;;  %685 = vst [vmem:[%s1241_s7 + $0x180] sm:$0xff] %v488_v31  ;;  %v310_v41 = vld [vmem:[%s1224_s30 + $0x1b0] sm:$0xff]  ;;  %v311_v42 = vld [vmem:[%s1224_s30 + $0x1b8] sm:$0xff]  ;;  %v497_v50 = vsel %vm403_vm1, %v494_v34, %v496_v38  ;;  %v499_v51 = vsel %vm403_vm1, %v496_v38, %v498_v39  ;;  %v504_v53 = vrot.slane %v309_v35, 3  ;;  %v627_v58 = vsel %vm620_vm0, %v254_v36, %v1233_v3 }
  0x90   : > { %687 = vst [vmem:[%s1241_s7 + $0x190] sm:$0xff] %v634_v37  ;;  %v312_v47 = vld [vmem:[%s1224_s30 + $0x1c0] sm:$0xff]  ;;  %v313_v48 = vld [vmem:[%s1224_s30 + $0x1c8] sm:$0xff]  ;;  %v314_v49 = vld [vmem:[%s1224_s30 + $0x1d0] sm:$0xff]  ;;  %v501_v52 = vsel %vm403_vm1, %v498_v39, %v500_v40  ;;  %v503_v56 = vsel %vm403_vm1, %v500_v40, %v502_v46  ;;  %v506_v57 = vrot.slane %v310_v41, 3  ;;  %v507_v59 = vrot.slane %v311_v42, 3 }
  0x91   : > { %688 = vst [vmem:[%s1241_s7 + $0x198] sm:$0xff] %v491_v43  ;;  %689 = vst [vmem:[%s1241_s7 + $0x1a0] sm:$0xff] %v493_v44  ;;  %v315_v54 = vld [vmem:[%s1224_s30 + $0x1d8] sm:$0xff]  ;;  %v316_v55 = vld [vmem:[%s1224_s30 + $0x1e0] sm:$0xff]  ;;  %v505_v61 = vsel %vm403_vm1, %v502_v46, %v504_v53  ;;  %v509_v62 = vrot.slane %v312_v47, 3  ;;  %v511_v63 = vrot.slane %v313_v48, 3 }
  0x92   : > { %690 = vst [vmem:[%s1241_s7 + $0x1a8] sm:$0xff] %v495_v45  ;;  %691 = vst [vmem:[%s1241_s7 + $0x1b0] sm:$0xff] %v497_v50  ;;  %v317_v60 = vld [vmem:[%s1224_s30 + $0x1e8] sm:$0xff]  ;;  %v513_v0 = vrot.slane %v314_v49, 3  ;;  %v318_v1 = vld [vmem:[%s1224_s30 + $0x1f0] sm:$0xff]  ;;  %v635_v4 = vsel %vm403_vm1, %v627_v58, %v506_v57  ;;  %v508_v5 = vsel %vm403_vm1, %v506_v57, %v507_v59  ;;  %v515_v6 = vrot.slane %v315_v54, 3 }
  0x93   : > { %692 = vst [vmem:[%s1241_s7 + $0x1b8] sm:$0xff] %v499_v51  ;;  %693 = vst [vmem:[%s1241_s7 + $0x1c0] sm:$0xff] %v501_v52  ;;  %v319_v2 = vld [vmem:[%s1224_s30 + $0x1f8] sm:$0xff]  ;;  %v517_v7 = vrot.slane %v316_v55, 3  ;;  %v320_v9 = vld [vmem:[%s1224_s30 + $0x200] sm:$0xff]  ;;  %v510_v11 = vsel %vm403_vm1, %v507_v59, %v509_v62  ;;  %v512_v12 = vsel %vm403_vm1, %v509_v62, %v511_v63  ;;  %v519_v14 = vrot.slane %v317_v60, 3 }
  0x94   : > { %694 = vst [vmem:[%s1241_s7 + $0x1c8] sm:$0xff] %v503_v56  ;;  %696 = vst [vmem:[%s1241_s7 + $0x1d8] sm:$0x1f] %v504_v53  ;;  %v255_v8 = vld [vmem:[%s1214_s28 + $0x7] sm:$0x1]  ;;  %v321_v10 = vld [vmem:[%s1224_s30 + $0x208] sm:$0xff]  ;;  %v514_v13 = vsel %vm403_vm1, %v511_v63, %v513_v0  ;;  %v516_v17 = vsel %vm403_vm1, %v513_v0, %v515_v6 }
  0x95   : > { %695 = vst [vmem:[%s1241_s7 + $0x1d0] sm:$0xff] %v505_v61  ;;  %697 = vst [vmem:[%s1241_s7 + $0x1e0] sm:$0xff] %v635_v4  ;;  %v322_v15 = vld [vmem:[%s1224_s30 + $0x210] sm:$0xff]  ;;  %v323_v16 = vld [vmem:[%s1224_s30 + $0x218] sm:$0xff]  ;;  %v518_v18 = vsel %vm403_vm1, %v515_v6, %v517_v7  ;;  %v521_v19 = vrot.slane %v318_v1, 3  ;;  %v523_v20 = vrot.slane %v319_v2, 3  ;;  %v520_v23 = vsel %vm403_vm1, %v517_v7, %v519_v14 }
  0x96   : > { %698 = vst [vmem:[%s1241_s7 + $0x1e8] sm:$0xff] %v508_v5  ;;  %699 = vst [vmem:[%s1241_s7 + $0x1f0] sm:$0xff] %v510_v11  ;;  %v324_v21 = vld [vmem:[%s1224_s30 + $0x220] sm:$0xff]  ;;  %v325_v22 = vld [vmem:[%s1224_s30 + $0x228] sm:$0xff]  ;;  %v628_v24 = vsel %vm620_vm0, %v255_v8, %v1233_v3  ;;  %v524_v25 = vrot.slane %v320_v9, 3  ;;  %v526_v26 = vrot.slane %v321_v10, 3 }
  0x97   : > { %700 = vst [vmem:[%s1241_s7 + $0x1f8] sm:$0xff] %v512_v12  ;;  %701 = vst [vmem:[%s1241_s7 + $0x200] sm:$0xff] %v514_v13  ;;  %v326_v27 = vld [vmem:[%s1224_s30 + $0x230] sm:$0xff]  ;;  %v327_v28 = vld [vmem:[%s1224_s30 + $0x238] sm:$0xff]  ;;  %v522_v29 = vsel %vm403_vm1, %v519_v14, %v521_v19  ;;  %v636_v30 = vsel %vm403_vm1, %v628_v24, %v523_v20  ;;  %v528_v31 = vrot.slane %v322_v15, 3  ;;  %v530_v32 = vrot.slane %v323_v16, 3 }
  0x98   : > { %702 = vst [vmem:[%s1241_s7 + $0x208] sm:$0xff] %v516_v17  ;;  %703 = vst [vmem:[%s1241_s7 + $0x210] sm:$0xff] %v518_v18  ;;  %v525_v3 = vsel %vm403_vm1, %v523_v20, %v524_v25  ;;  %v527_v33 = vsel %vm403_vm1, %v524_v25, %v526_v26  ;;  %v532_v34 = vrot.slane %v324_v21, 3  ;;  %v534_v35 = vrot.slane %v325_v22, 3 }
  0x99   : > { %704 = vst [vmem:[%s1241_s7 + $0x218] sm:$0xff] %v520_v23  ;;  %706 = vst [vmem:[%s1241_s7 + $0x228] sm:$0x1f] %v521_v19  ;;  %v529_v36 = vsel %vm403_vm1, %v526_v26, %v528_v31  ;;  %v531_v37 = vsel %vm403_vm1, %v528_v31, %v530_v32  ;;  %v536_v38 = vrot.slane %v326_v27, 3  ;;  %v538_v39 = vrot.slane %v327_v28, 3 }
  0x9a   : > { %705 = vst [vmem:[%s1241_s7 + $0x220] sm:$0xff] %v522_v29  ;;  %707 = vst [vmem:[%s1241_s7 + $0x230] sm:$0xff] %v636_v30  ;;  %v533_v40 = vsel %vm403_vm1, %v530_v32, %v532_v34  ;;  %v535_v41 = vsel %vm403_vm1, %v532_v34, %v534_v35 }
  0x9b   : > { %708 = vst [vmem:[%s1241_s7 + $0x238] sm:$0xff] %v525_v3  ;;  %709 = vst [vmem:[%s1241_s7 + $0x240] sm:$0xff] %v527_v33  ;;  %v537_v42 = vsel %vm403_vm1, %v534_v35, %v536_v38  ;;  %v539_v43 = vsel %vm403_vm1, %v536_v38, %v538_v39 }
  0x9c   : > { %710 = vst [vmem:[%s1241_s7 + $0x248] sm:$0xff] %v529_v36  ;;  %711 = vst [vmem:[%s1241_s7 + $0x250] sm:$0xff] %v531_v37 }
  0x9d   : > { %712 = vst [vmem:[%s1241_s7 + $0x258] sm:$0xff] %v533_v40  ;;  %713 = vst [vmem:[%s1241_s7 + $0x260] sm:$0xff] %v535_v41 }
  0x9e   : > { %716 = vst [vmem:[%s1241_s7 + $0x278] sm:$0x1f] %v538_v39  ;;  %714 = vst [vmem:[%s1241_s7 + $0x268] sm:$0xff] %v537_v42 }
  0x9f   : > { %715 = vst [vmem:[%s1241_s7 + $0x270] sm:$0xff] %v539_v43 }
  0xa0 PF: > { %p14_p13 = scmp.ge.s32.totalorder %s1078_s16, 4   ;;  %s1520_s12 = smov %s1020_s13 }
  0xa1   : > { %s1521_s13 = smov %s1024_s14  ;;  %s1522_s14 = smov %s1088_s19 }
  0xa2   : > { %s1523_s15 = smov %s1078_s16  ;;  %16 = sbr.rel (!%p14_p13) target bundleno = 4 (0x4), region = 87 }
  0xa9   :  { %741 = vsyncpa [#allocation3], 1 }
  0xaa   :  { %743 = vsyncpa [#allocation3 + $0x1], 1 }
  0xab   :  { %744 = vsyncpa [#allocation5], 1 }

</bundles_post_ra>
